<compile_context>
chip_gen: v7x
topology: tpu7x:2x2x1
jax: 0.10.0
libtpu: 0.0.40
codegen_flags: <defaults>
</compile_context>

<pallas_src>
import functools

import jax
import jax.numpy as jnp
from jax.experimental import pallas as pl
from jax.experimental.pallas import tpu as pltpu


def _mean_sub_kernel(x_ref, o_ref, *, inv_hidden):
    x = x_ref[...]
    # Cross-lane reduction in f32 (goes to the XLU), mean via multiply by a
    # compile-time constant (cheap VALU op, no vdiv/EUP).
    s = jnp.sum(x.astype(jnp.float32), axis=-1, keepdims=True)
    m = (s * inv_hidden).astype(x.dtype)
    # Subtract in the native dtype: halves vreg pressure for bf16 on v6e/v7x.
    o_ref[...] = (x - m).astype(o_ref.dtype)


def _sublane_align(itemsize):
    # Rows per sublane-packed vreg: 8 for 4B dtypes, 16 for 2B, 32 for 1B.
    return max(8, 32 // max(1, itemsize))


def _pick_row_tile(rows, hidden, itemsize,
                   target_tile_bytes=4 << 20,   # ~4 MiB input tile
                   max_tile_bytes=6 << 20):     # 4 x 6 MiB in-flight <= 24 MiB (v7x-safe)
    align = _sublane_align(itemsize)
    row_bytes = hidden * itemsize
    rt = (target_tile_bytes // row_bytes) // align * align
    rt_max = (max_tile_bytes // row_bytes) // align * align
    rt = max(align, min(rt, rt_max))
    rows_aligned = ((rows + align - 1) // align) * align
    # TODO(synk): for hidden so large that even `align` rows overflow VMEM,
    # add a second grid axis over hidden with a running-sum mean.
    return min(rt, rows_aligned)


def linear_norm(x, *, row_tile=None):
    """x - mean(x, axis=-1, keepdims=True), computed in a Pallas TPU kernel."""
    orig_shape = x.shape
    hidden = orig_shape[-1]
    rows = 1
    for d in orig_shape[:-1]:
        rows *= d
    x2d = x.reshape(rows, hidden)

    itemsize = jnp.dtype(x.dtype).itemsize
    align = _sublane_align(itemsize)
    if row_tile is None:
        row_tile = _pick_row_tile(rows, hidden, itemsize)
    else:
        # Respect user choice but keep it sublane-aligned and not absurdly big.
        row_tile = max(align, ((row_tile + align - 1) // align) * align)
        row_tile = min(row_tile, ((rows + align - 1) // align) * align)

    grid = pl.cdiv(rows, row_tile)
    tile_bytes = row_tile * hidden * itemsize
    # 2x(in + out) double-buffered tiles plus headroom; stay <= 64 MiB (v7x).
    vmem_limit = int(min(64 << 20, max(32 << 20, 6 * tile_bytes)))

    kernel = functools.partial(_mean_sub_kernel, inv_hidden=1.0 / hidden)

    out2d = pl.pallas_call(
        kernel,
        out_shape=jax.ShapeDtypeStruct((rows, hidden), x.dtype),
        grid_spec=pltpu.PrefetchScalarGridSpec(
            num_scalar_prefetch=0,
            grid=(grid,),
            in_specs=[pl.BlockSpec((row_tile, hidden), lambda i: (i, 0))],
            out_specs=pl.BlockSpec((row_tile, hidden), lambda i: (i, 0)),
        ),
        compiler_params=pltpu.CompilerParams(
            dimension_semantics=("parallel",),
            vmem_limit_bytes=vmem_limit,
        ),
        cost_estimate=pl.CostEstimate(
            flops=2 * rows * hidden,
            transcendentals=0,
            bytes_accessed=2 * rows * hidden * itemsize,
        ),
    )(x2d)

    return out2d.reshape(orig_shape)


if __name__ == "__main__":
    # LinearNorm has no parameters, so only an input tensor is needed.
    key = jax.random.PRNGKey(0)

    # Small test consistent with the module's forward (..., hidden).
    batch, seq, hidden = 2, 8, 32
    x = jax.random.normal(key, (batch, seq, hidden), dtype=jnp.float32)
    out = jax.block_until_ready(linear_norm(x))
    ref = x - jnp.mean(x, axis=-1, keepdims=True)
    assert out.shape == x.shape and out.dtype == x.dtype
    assert jnp.allclose(out, ref, atol=1e-5, rtol=1e-5)

    # Exercise the ragged-last-block (cdiv) path with an explicit row_tile.
    k2 = jax.random.PRNGKey(1)
    x2 = jax.random.normal(k2, (4, 37, 256), dtype=jnp.float32)  # rows=148
    out2 = jax.block_until_ready(linear_norm(x2, row_tile=64))   # grid=3, last block ragged
    ref2 = x2 - jnp.mean(x2, axis=-1, keepdims=True)
    assert jnp.allclose(out2, ref2, atol=1e-5, rtol=1e-5)

    print("KERNEL_OK")
</pallas_src>

<mosaic_0001>
module attributes {stable_mosaic.version = 11 : i64} {
  func.func @_mean_sub_kernel(%arg0: i32, %arg1: memref<16x32xf32, #tpu.memory_space<vmem>>, %arg2: memref<16x32xf32, #tpu.memory_space<vmem>>) attributes {dimension_semantics = [#tpu.dimension_semantics<parallel>], iteration_bounds = array<i64: 1>, scalar_prefetch = 0 : i64, scratch_operands = 0 : i64, tpu.core_type = #tpu.core_type<tc>, window_params = [{transform_indices = @transform_0, window_bounds = array<i64: 16, 32>}, {transform_indices = @transform_1, window_bounds = array<i64: 16, 32>}]} {
    %c0 = arith.constant 0 : index
    %c0_0 = arith.constant 0 : index
    %0 = vector.load %arg1[%c0, %c0_0] : memref<16x32xf32, #tpu.memory_space<vmem>>, vector<16x32xf32>
    %cst = arith.constant dense<0.000000e+00> : vector<16xf32>
    %1 = vector.multi_reduction <add>, %0, %cst [1] : vector<16x32xf32> to vector<16xf32>
    %2 = vector.shape_cast %1 : vector<16xf32> to vector<16x1xf32>
    %cst_1 = arith.constant 3.125000e-02 : f32
    %3 = vector.broadcast %cst_1 : f32 to vector<16x1xf32>
    %4 = arith.mulf %2, %3 : vector<16x1xf32>
    %5 = vector.broadcast %4 : vector<16x1xf32> to vector<16x32xf32>
    %6 = arith.subf %0, %5 : vector<16x32xf32>
    %c0_2 = arith.constant 0 : index
    %c0_3 = arith.constant 0 : index
    %7 = vector.load %arg2[%c0_2, %c0_3] : memref<16x32xf32, #tpu.memory_space<vmem>>, vector<16x32xf32>
    tpu.vector_store %arg2[%c0_2, %c0_3], %6 {strides = array<i32>} : memref<16x32xf32, #tpu.memory_space<vmem>>, vector<16x32xf32>,
    return
  }
  func.func @transform_0(%arg0: i32) -> (i32, i32) {
    %c0_i32 = arith.constant 0 : i32
    %c0_i32_0 = arith.constant 0 : i32
    return %arg0, %c0_i32 : i32, i32
  }
  func.func @transform_1(%arg0: i32) -> (i32, i32) {
    %c0_i32 = arith.constant 0 : i32
    %c0_i32_0 = arith.constant 0 : i32
    return %arg0, %c0_i32 : i32, i32
  }
}

</mosaic_0001>

<bundles_post_ra>
// kernel: tpu_custom_call.1
= control target key start
LH: loop header
LB: loop body
LE: loop exit
PB: predicated region body
PF: predicated region fallthrough
CT: control target
= control target key end

     0   :  { %6 = vsyncpa [#allocation3], 0  ;;  %s155_s0 = inlined_call_operand.hbm [shape: f32[16,32], index: 0, kind: input, shape index: {}]   ;;  %s156_s1 = inlined_call_operand.hbm [shape: f32[16,32], index: 1, kind: output, shape index: {}]  }
   0x1   :  { %7 = vsyncpa [#allocation4], 0  ;;  %s107_s6 = smov [#allocation2]   ;;  %s59_s10 = scalar_lea.hbm %s155_s0, 256 }
   0x2   :  { %s13_s7 = sshll.u32 %s107_s6, 4  ;;  %p60_p0 = scmp.ne.s32.totalorder %s155_s0, %s59_s10  ;;  %s14_s7 = int_to_ptr.vmem [resolvable:$true] %s13_s7 }
   0x3   :  { %p63_p1 = scmp.lt.u32.totalorder %s59_s10, %s155_s0 }
   0x5   :  { %p65_p2 = pnand %p63_p1, %p60_p0 }
   0x7   :  { %68 = shalt.err (!%p65_p2)
}
   0x8   :  { %s69_s15 = scalar_lea.vmem %s14_s7, 256  ;;  %p74_p4 = scmp.lt.s32.totalorder %s14_s7, %s14_s7 }
   0x9   :  { %p70_p3 = scmp.ne.s32.totalorder %s14_s7, %s69_s15  ;;  %p75_p5 = scmp.lt.s32.totalorder %s69_s15, %s69_s15 }
   0xb   :  { %p76_p6 = por %p75_p5, %p74_p4 }
   0xd   :  { %p77_p7 = pnand %p76_p6, %p70_p3 }
   0xf   :  { %80 = shalt.err (!%p77_p7)
}
  0x10   :  { %s108_s16 = smov 128   ;;  %s109_s17 = smov 8  }
  0x11   :  { %19 = dma.hbm_to_vmem [thread:$0]  %s155_s0, 256, %s14_s7, [#allocation3], %s108_s16, %s108_s16, %s109_s17  }
  0x12   :  { %103 = dma.done.wait [#allocation3], 256  }
  0x13   :  { %104 = vsyncadd [#allocation3], 4294967040  ;;  %vm25_vm0 = vcmask 261120   ;;  %v23_v0 = vld [vmem:[#allocation2] sm:$0xff]  ;;  %v24_v1 = vld [vmem:[#allocation2 + $0x8] sm:$0xff]  ;;  %s110_s20 = smov [#allocation5]  }
  0x14   :  { %v26_v2 = vsel %vm25_vm0, %v23_v0, 0.0  ;;  %v29_v3 = vsel %vm25_vm0, %v24_v1, 0.0  ;;  %s43_s21 = sshll.u32 %s110_s20, 4  ;;  %s44_s21 = int_to_ptr.vmem [resolvable:$true] %s43_s21 }
  0x15   :  { %27 = vadd.xlane.f32.xlu0 %v26_v2  ;;  %s81_s0 = scalar_lea.vmem %s44_s21, 256  ;;  %p86_p9 = scmp.lt.s32.totalorder %s44_s21, %s44_s21 }
  0x16   :  { %p82_p8 = scmp.ne.s32.totalorder %s44_s21, %s81_s0  ;;  %p87_p10 = scmp.lt.s32.totalorder %s81_s0, %s81_s0 }
  0x18   :  { %p88_p11 = por %p87_p10, %p86_p9 }
  0x19   :  { %30 = vadd.xlane.f32.xlu0 %v29_v3 }
  0x1a   :  { %p89_p12 = pnand %p88_p11, %p82_p8 }
  0xa2   :  { %v28_v4 = vpop.xlane.xlu0 %27 }
  0xa3   :  { %v32_v5 = vmul.f32 0.03125, %v28_v4 }
  0xa5   :  { %v34_v6 = vsub.f32 %v23_v0, %v32_v5 }
  0xa6   :  { %v31_v7 = vpop.xlane.xlu0 %30 }
  0xa7   :  { %36 = vst.msk [vmem:[#allocation5] sm:$0xff] %vm25_vm0, %v34_v6  ;;  %v33_v8 = vmul.f32 0.03125, %v31_v7 }
  0xa9   :  { %v35_v9 = vsub.f32 %v24_v1, %v33_v8 }
  0xab   :  { %37 = vst.msk [vmem:[#allocation5 + $0x8] sm:$0xff] %vm25_vm0, %v35_v9 }
  0xac   :  { %92 = shalt.err (!%p89_p12)
}
  0xad   :  { %s93_s24 = scalar_lea.hbm %s156_s1, 256 }
  0xae   :  { %p94_p13 = scmp.ne.s32.totalorder %s156_s1, %s93_s24  ;;  %p97_p0 = scmp.lt.u32.totalorder %s93_s24, %s156_s1 }
  0xb0   :  { %p99_p1 = pnand %p97_p0, %p94_p13 }
  0xb2   :  { %102 = shalt.err (!%p99_p1)
}
  0xb3   :  { %49 = dma.vmem_to_hbm [thread:$0]  %s44_s21, 256, %s156_s1, [#allocation4], %s108_s16, %s108_s16, %s109_s17  }
  0xb4   :  { %105 = dma.done.wait [#allocation4], 256  }
  0xb5   :  { %106 = vsyncadd [#allocation4], 4294967040 }
  0xb6   :  { %53 = vsyncpa [#allocation3], 1 }
  0xb7   :  { %54 = vsyncpa [#allocation4], 1 }

</bundles_post_ra>
